<compile_context>
chip_gen: v6e
topology: v6e:2x2x1
jax: 0.10.0
libtpu: 0.0.40
codegen_flags: <defaults>
</compile_context>

<pallas_src>
import numpy as np
import jax
import jax.numpy as jnp
from jax.experimental import pallas as pl
from jax.experimental.pallas import tpu as pltpu


def _output_block_kernel(x_ref, w1_ref, b1_ref, w2_ref, out_ref):
    # x:  (B, in_ch)        bf16   grid-invariant
    # w1: (in_ch, tf*H)     bf16   tile t = features [t*tf, (t+1)*tf)
    # b1: (1, tf*H)         f32
    # w2: (tf, nc, H)       f32    dense per-feature layer-2 weights
    # out:(B, Cpad)         f32    lane-dense resident accumulator
    t = pl.program_id(0)

    @pl.when(t == 0)
    def _init():
        # Zero once: this also zeroes the lane-padding columns of the slab.
        out_ref[...] = jnp.zeros_like(out_ref)

    B = x_ref.shape[0]
    tf, nc, H = w2_ref.shape
    W = tf * nc
    Cpad = out_ref.shape[1]

    # ---- layer 1: bf16 MXU matmul with f32 accumulation, bias + ReLU ------
    h = jnp.dot(x_ref[...], w1_ref[...], preferred_element_type=jnp.float32)
    h = jnp.maximum(h + b1_ref[...], 0.0)                      # (B, tf*H) f32

    # ---- layer 2: dense per-feature contraction (VPU mul + lane reduce) ---
    w2v = w2_ref[...].astype(jnp.float32)                      # (tf, nc, H)
    cols = []
    for j in range(tf):                                        # static loop
        h_j = h[:, j * H:(j + 1) * H]                          # (B, H)
        for c in range(nc):                                    # static loop
            w_row = w2v[j, c:c + 1, :]                         # (1, H)
            cols.append(jnp.sum(h_j * w_row, axis=1, keepdims=True))  # (B, 1)
    pred = cols[0] if W == 1 else jnp.concatenate(cols, axis=1)       # (B, W)

    # ---- scatter the W valid columns into the lane-dense (B, Cpad) slab ---
    start = t * W
    if W == 1:
        col_ids = jax.lax.broadcasted_iota(jnp.int32, (B, Cpad), 1)
        contrib = jnp.where(col_ids == start, pred, 0.0)
    else:
        row_ids = jax.lax.broadcasted_iota(jnp.int32, (W, Cpad), 0)
        col_ids = jax.lax.broadcasted_iota(jnp.int32, (W, Cpad), 1)
        sel = (col_ids == row_ids + start).astype(jnp.float32)  # one-hot placement
        contrib = jnp.dot(pred, sel, preferred_element_type=jnp.float32)
    out_ref[...] += contrib


def output_block_pallas(x, w1, b1, w2, *, features_per_tile=1):
    """x: (B,in_ch) bf16; w1: (in_ch,F*H) bf16; b1: (1,F*H) f32; w2: (F,nc,H) f32."""
    B, in_ch = x.shape
    F, nc, H = w2.shape
    assert w1.shape[1] == F * H
    tf = features_per_tile
    assert F % tf == 0
    num_tiles = F // tf
    T = tf * H
    C = F * nc
    Cpad = ((C + 127) // 128) * 128                    # lane-dense output width

    flops = 2 * B * in_ch * F * H + 2 * B * F * H * nc
    bytes_accessed = int(x.size * x.dtype.itemsize + w1.size * w1.dtype.itemsize
                         + b1.size * b1.dtype.itemsize + w2.size * w2.dtype.itemsize
                         + B * Cpad * 4)

    return pl.pallas_call(
        _output_block_kernel,
        out_shape=jax.ShapeDtypeStruct((B, Cpad), jnp.float32),
        grid=(num_tiles,),
        in_specs=[
            # x is grid-invariant -> single-buffered (no wasted VMEM copy).
            pl.BlockSpec((B, in_ch), lambda t: (0, 0),
                         pipeline_mode=pl.Buffered(1)),
            pl.BlockSpec((in_ch, T), lambda t: (0, t)),       # streamed weight tile
            pl.BlockSpec((1, T), lambda t: (0, t)),
            pl.BlockSpec((tf, nc, H), lambda t: (t, 0, 0)),   # dense layer-2 tile
        ],
        out_specs=pl.BlockSpec((B, Cpad), lambda t: (0, 0)),  # resident accumulator
        compiler_params=pltpu.CompilerParams(
            dimension_semantics=("arbitrary",),
            vmem_limit_bytes=32 * 1024 * 1024),
        cost_estimate=pl.CostEstimate(flops=int(flops), transcendentals=0,
                                      bytes_accessed=bytes_accessed),
    )(x, w1, b1, w2)


def _glorot(key, fan_in, fan_out, shape):
    # Xavier/glorot uniform, matching init_weights(..., init_type='glorot').
    limit = float(np.sqrt(6.0 / (fan_in + fan_out)))
    return jax.random.uniform(key, shape, jnp.float32, -limit, limit)


def build_params(key, in_ch, n_features, n_classes=1, hidden=512,
                 weight_dtype=jnp.bfloat16):
    """One-time packing of per-feature weights into the fused kernel layout."""
    F, H, nc = n_features, hidden, n_classes
    keys = jax.random.split(key, 2 * F)
    w1_list, w2_list = [], []
    for i in range(F):
        # torch Linear(in_ch, H): weight (H, in_ch) -> stored transposed (in_ch, H)
        w1_list.append(_glorot(keys[2 * i], in_ch, H, (in_ch, H)))
        # torch Linear(H, nc, bias=False): stored transposed (H, nc)
        w2_list.append(_glorot(keys[2 * i + 1], H, nc, (H, nc)))
    w1 = jnp.concatenate(w1_list, axis=1).astype(weight_dtype)   # (in_ch, F*H)
    b1 = jnp.zeros((1, F * H), jnp.float32)                      # glorot leaves bias 0
    # Dense layer-2 weights, lane-friendly layout (F, nc, H): H in the minor
    # dim avoids XLA padding a 1-wide minor dim out to 128 lanes in HBM.
    w2 = jnp.stack([w.T for w in w2_list], axis=0).astype(jnp.float32)
    # Per-feature copies for the pure-JAX reference (same bf16-rounded w1).
    per_feature = [(w1[:, i * H:(i + 1) * H].astype(jnp.float32),
                    jnp.zeros((H,), jnp.float32),
                    w2_list[i].astype(jnp.float32)) for i in range(F)]
    return w1, b1, w2, per_feature


def make_output_block_forward(w1, b1, w2, n_out, *, features_per_tile=1):
    """Fully traced / jitted forward: pallas kernel + static column slice."""
    @jax.jit
    def forward(inputs):
        x = inputs.astype(jnp.float32)
        if x.ndim < 2:                                   # inputs.unsqueeze(0)
            x = x[None, :]
        x = x.astype(w1.dtype)   # bf16 activation feed; f32 accumulation in-kernel
        pred_pad = output_block_pallas(x, w1, b1, w2,
                                       features_per_tile=features_per_tile)
        return pred_pad[:, :n_out]                       # (B, F * n_classes)
    return forward


def output_block_reference(inputs, per_feature):
    """Pure-JAX reference (same bf16-rounded inputs/weights, f32 math)."""
    x = inputs.astype(jnp.float32)
    if x.ndim < 2:
        x = x[None, :]
    x = x.astype(jnp.bfloat16).astype(jnp.float32)       # same rounding as kernel
    hi = jax.lax.Precision.HIGHEST
    preds = []
    for w1_i, b1_i, w2_i in per_feature:
        h = jnp.maximum(jnp.dot(x, w1_i, precision=hi) + b1_i, 0.0)
        preds.append(jnp.dot(h, w2_i, precision=hi))
    return jnp.concatenate(preds, axis=1)


if __name__ == "__main__":
    in_ch = 64
    n_features = 3
    n_classes = 1
    hidden = 512
    B = 2

    key = jax.random.PRNGKey(0)
    k_in, k_w = jax.random.split(key)
    inputs = jax.random.normal(k_in, (B, in_ch), jnp.float32)

    w1, b1, w2, per_feature = build_params(k_w, in_ch, n_features,
                                           n_classes, hidden)
    forward = make_output_block_forward(w1, b1, w2, n_features * n_classes,
                                        features_per_tile=1)

    pred_all = jax.block_until_ready(forward(inputs))
    pred_ref = jax.block_until_ready(output_block_reference(inputs, per_feature))

    assert pred_all.shape == (B, n_features * n_classes), pred_all.shape
    np.testing.assert_allclose(np.asarray(pred_all), np.asarray(pred_ref),
                               rtol=1e-3, atol=1e-3)
    print("KERNEL_OK")
</pallas_src>

<mosaic_0001>
module attributes {stable_mosaic.version = 11 : i64} {
  func.func @_output_block_kernel(%arg0: i32, %arg1: memref<2x64xbf16, #tpu.memory_space<vmem>>, %arg2: memref<64x512xbf16, #tpu.memory_space<vmem>>, %arg3: memref<1x512xf32, #tpu.memory_space<vmem>>, %arg4: memref<1x1x512xf32, #tpu.memory_space<vmem>>, %arg5: memref<2x128xf32, #tpu.memory_space<vmem>>) attributes {dimension_semantics = [#tpu.dimension_semantics<arbitrary>], iteration_bounds = array<i64: 3>, scalar_prefetch = 0 : i64, scratch_operands = 0 : i64, tpu.core_type = #tpu.core_type<tc>, window_params = [{pipeline_mode = #tpu.pipeline_mode<synchronous>, transform_indices = @transform_0, window_bounds = array<i64: 2, 64>}, {transform_indices = @transform_1, window_bounds = array<i64: 64, 512>}, {transform_indices = @transform_2, window_bounds = array<i64: 1, 512>}, {transform_indices = @transform_3, window_bounds = array<i64: 1, 1, 512>}, {pipeline_mode = #tpu.pipeline_mode<synchronous>, transform_indices = @transform_4, window_bounds = array<i64: 2, 128>}]} {
    %c0_i32 = arith.constant 0 : i32
    %0 = arith.cmpi eq, %arg0, %c0_i32 : i32
    %1 = arith.extui %0 : i1 to i32
    %c0_i32_0 = arith.constant 0 : i32
    %2 = arith.cmpi ne, %1, %c0_i32_0 : i32
    scf.if %2 {
      %cst_16 = arith.constant 0.000000e+00 : f32
      %28 = vector.broadcast %cst_16 : f32 to vector<2x128xf32>
      %c0_17 = arith.constant 0 : index
      %c0_18 = arith.constant 0 : index
      %29 = vector.load %arg5[%c0_17, %c0_18] : memref<2x128xf32, #tpu.memory_space<vmem>>, vector<2x128xf32>
      tpu.vector_store %arg5[%c0_17, %c0_18], %28 {strides = array<i32>} : memref<2x128xf32, #tpu.memory_space<vmem>>, vector<2x128xf32>,
    } else {
    }
    %c0 = arith.constant 0 : index
    %c0_1 = arith.constant 0 : index
    %3 = vector.load %arg1[%c0, %c0_1] : memref<2x64xbf16, #tpu.memory_space<vmem>>, vector<2x64xbf16>
    %c0_2 = arith.constant 0 : index
    %c0_3 = arith.constant 0 : index
    %4 = vector.load %arg2[%c0_2, %c0_3] : memref<64x512xbf16, #tpu.memory_space<vmem>>, vector<64x512xbf16>
    %cst = arith.constant dense<0.000000e+00> : vector<2x512xf32>
    %5 = tpu.matmul %3, %4, %cst {dimension_numbers = #tpu.dot_dimension_numbers<[1], [0], [0], [1], [0, 0, 1, 1], [], []>} : vector<2x64xbf16>, vector<64x512xbf16>, vector<2x512xf32> -> vector<2x512xf32>
    %c0_4 = arith.constant 0 : index
    %c0_5 = arith.constant 0 : index
    %6 = vector.load %arg3[%c0_4, %c0_5] : memref<1x512xf32, #tpu.memory_space<vmem>>, vector<1x512xf32>
    %7 = vector.broadcast %6 : vector<1x512xf32> to vector<2x512xf32>
    %8 = arith.addf %5, %7 : vector<2x512xf32>
    %cst_6 = arith.constant 0.000000e+00 : f32
    %9 = vector.broadcast %cst_6 : f32 to vector<2x512xf32>
    %10 = arith.maximumf %8, %9 : vector<2x512xf32>
    %c0_7 = arith.constant 0 : index
    %c0_8 = arith.constant 0 : index
    %c0_9 = arith.constant 0 : index
    %11 = vector.load %arg4[%c0_7, %c0_8, %c0_9] : memref<1x1x512xf32, #tpu.memory_space<vmem>>, vector<1x1x512xf32>
    %12 = vector.shape_cast %11 : vector<1x1x512xf32> to vector<1x512xf32>
    %13 = vector.broadcast %12 : vector<1x512xf32> to vector<2x512xf32>
    %14 = arith.mulf %10, %13 : vector<2x512xf32>
    %cst_10 = arith.constant dense<0.000000e+00> : vector<2xf32>
    %15 = vector.multi_reduction <add>, %14, %cst_10 [1] : vector<2x512xf32> to vector<2xf32>
    %16 = vector.shape_cast %15 : vector<2xf32> to vector<2x1xf32>
    %c1_i32 = arith.constant 1 : i32
    %17 = arith.muli %arg0, %c1_i32 : i32
    %18 = tpu.iota {dimensions = array<i32: 1>} : vector<2x128xi32>
    %19 = vector.broadcast %17 : i32 to vector<2x128xi32>
    %20 = arith.cmpi eq, %18, %19 : vector<2x128xi32>
    %cst_11 = arith.constant 0.000000e+00 : f32
    %21 = vector.shape_cast %16 : vector<2x1xf32> to vector<2x1xf32>
    %22 = vector.broadcast %21 : vector<2x1xf32> to vector<2x128xf32>
    %23 = vector.broadcast %cst_11 : f32 to vector<2x128xf32>
    %24 = arith.select %20, %22, %23 : vector<2x128xi1>, vector<2x128xf32>
    %c0_12 = arith.constant 0 : index
    %c0_13 = arith.constant 0 : index
    %25 = vector.load %arg5[%c0_12, %c0_13] : memref<2x128xf32, #tpu.memory_space<vmem>>, vector<2x128xf32>
    %26 = arith.addf %25, %24 : vector<2x128xf32>
    %c0_14 = arith.constant 0 : index
    %c0_15 = arith.constant 0 : index
    %27 = vector.load %arg5[%c0_14, %c0_15] : memref<2x128xf32, #tpu.memory_space<vmem>>, vector<2x128xf32>
    tpu.vector_store %arg5[%c0_14, %c0_15], %26 {strides = array<i32>} : memref<2x128xf32, #tpu.memory_space<vmem>>, vector<2x128xf32>,
    return
  }
  func.func @transform_0(%arg0: i32) -> (i32, i32) {
    %c0_i32 = arith.constant 0 : i32
    %c0_i32_0 = arith.constant 0 : i32
    %c0_i32_1 = arith.constant 0 : i32
    return %c0_i32, %c0_i32_0 : i32, i32
  }
  func.func @transform_1(%arg0: i32) -> (i32, i32) {
    %c0_i32 = arith.constant 0 : i32
    %c0_i32_0 = arith.constant 0 : i32
    return %c0_i32, %arg0 : i32, i32
  }
  func.func @transform_2(%arg0: i32) -> (i32, i32) {
    %c0_i32 = arith.constant 0 : i32
    %c0_i32_0 = arith.constant 0 : i32
    return %c0_i32, %arg0 : i32, i32
  }
  func.func @transform_3(%arg0: i32) -> (i32, i32, i32) {
    %c0_i32 = arith.constant 0 : i32
    %c0_i32_0 = arith.constant 0 : i32
    %c0_i32_1 = arith.constant 0 : i32
    return %arg0, %c0_i32, %c0_i32_0 : i32, i32, i32
  }
  func.func @transform_4(%arg0: i32) -> (i32, i32) {
    %c0_i32 = arith.constant 0 : i32
    %c0_i32_0 = arith.constant 0 : i32
    %c0_i32_1 = arith.constant 0 : i32
    return %c0_i32, %c0_i32_0 : i32, i32
  }
}

</mosaic_0001>

<bundles_post_ra>
// kernel: forward.1
= control target key start
LH: loop header
LB: loop body
LE: loop exit
PB: predicated region body
PF: predicated region fallthrough
CT: control target
= control target key end

     0   :  { %9 = vsyncpa [#allocation3], 0  ;;  %s960_s0 = inlined_call_operand.vmem [shape: bf16[2,64], index: 0, kind: input, shape index: {}]   ;;  %s961_s1 = inlined_call_operand.hbm [shape: bf16[64,1536], index: 1, kind: input, shape index: {}]   ;;  %s962_s2 = inlined_call_operand.vmem [shape: f32[1,1536], index: 2, kind: input, shape index: {}]   ;;  %s963_s3 = inlined_call_operand.vmem [shape: f32[3,1,512], index: 3, kind: input, shape index: {}]   ;;  %s964_s4 = inlined_call_operand.hbm [shape: f32[2,128], index: 4, kind: output, shape index: {}]  }
   0x1   :  { %11 = vsyncpa [#allocation3 + $0x1], 0 }
   0x2   :  { %12 = vsyncpa [#allocation4], 0  ;;  %s811_s15 = smov 0   ;;  %s813_s16 = smov 0  }
   0x3   :  { %s815_s17 = smov 0   ;;  %s817_s18 = smov 0  }
   0x4 LB: > { %s830_s19 = sadd.s32 4294967295, %s777_s18   ;;  %s833_s20 = sadd.s32 1, %s777_s18   ;;  %s777_s18 = sphi %s817_s18, %s972_s18   ;;  %s773_s17 = sphi %s815_s17, %s971_s17   ;;  %s769_s16 = sphi %s813_s16, %s970_s16   ;;  %s765_s15 = sphi %s811_s15, %s969_s15  }
   0x5   : > { %s43_s21 = ssub.s32 %s777_s18, %s833_s20  ;;  %s46_s22 = sadd.s32 1, %s773_s17 }
   0x6   : > { %p44_p0 = scmp.eq.s32.totalorder %s43_s21, 0  ;;  %p53_p1 = scmp.ne.s32.totalorder %s773_s17, %s769_s16 }
   0x7   : > { %p54_p2 = scmp.eq.s32.totalorder %s777_s18, 0  ;;  %p59_p3 = scmp.ne.s32.totalorder %s769_s16, %s765_s15 }
   0x8   : > { %s843_s23 = scalar_select %p44_p0, %s773_s17, %s46_s22  }
   0x9   : > { %p55_p4 = por %p54_p2, %p53_p1  ;;  %p60_p5 = scmp.eq.s32.totalorder %s830_s19, 0 }
   0xa   : > { %p622_p6 = scmp.lt.s32.totalorder %s777_s18, 3  ;;  %s159_s25 = sand.u32 1, %s773_s17  }
   0xb   : > { %p847_p7 = por %p60_p5, %p59_p3  ;;  %s581_s26 = sshll.u32 %s159_s25, 7 }
   0xc   : > { %s611_s27 = sshll.u32 %s777_s18, 8  ;;  %s163_s5 = scalar_lea.vmem [#allocation2], %s581_s26 }
   0xd   : > { %s966_s24 = scalar_select %p847_p7, 1, 0 }
   0xe   : > { %s856_s30 = scalar_lea.hbm %s961_s1, %s611_s27  ;;  %s170_s6 = sshll.u32 %s163_s5, 4  ;;  %s858_s6 = int_to_ptr.vmem [resolvable:$true] %s170_s6 }
   0xf   : > { %p860_p8 = pnand %p622_p6, %p55_p4  ;;  %s864_s8 = scalar_lea.sflag [#allocation3], %s159_s25 }
  0x10   : > { %s687_s9 = scalar_lea.hbm %s856_s30, 2048  ;;  %s692_s12 = scalar_lea.hbm %s961_s1, 6144 }
  0x11   : > { %p688_p9 = scmp.ne.s32.totalorder %s856_s30, %s687_s9  ;;  %p689_p10 = pneg %p860_p8 }
  0x12   : > { %p693_p13 = scmp.lt.s32.totalorder %s856_s30, %s961_s1  ;;  %p694_p0 = scmp.lt.s32.totalorder %s692_s12, %s687_s9 }
  0x13   : > { %p690_p11 = pnand %p689_p10, %p688_p9 }
  0x14   : > { %p695_p1 = por %p694_p0, %p693_p13 }
  0x15   : > { %p691_p12 = pneg %p690_p11 }
  0x17   : > { %p696_p2 = pnand %p695_p1, %p691_p12 }
  0x19   : > { %699 = shalt.err (!%p696_p2)
}
  0x1a   : > { %s700_s15 = scalar_lea.vmem %s858_s6, 2048  ;;  %s779_s21 = smov [#allocation2]  }
  0x1b   : > { %p701_p3 = scmp.ne.s32.totalorder %s858_s6, %s700_s15  ;;  %s705_s22 = sshll.u32 %s779_s21, 4  ;;  %s706_s22 = int_to_ptr.vmem [resolvable:$false] %s705_s22 }
  0x1c   : > { %s707_s25 = scalar_lea.vmem %s706_s22, 4096  ;;  %p708_p6 = scmp.lt.s32.totalorder %s858_s6, %s706_s22 }
  0x1d   : > { %p703_p4 = pnand %p701_p3, %p689_p10  ;;  %p709_p9 = scmp.lt.s32.totalorder %s707_s25, %s700_s15 }
  0x1f   : > { %p704_p5 = pneg %p703_p4  ;;  %p710_p11 = por %p709_p9, %p708_p6 }
  0x21   : > { %p711_p7 = pnand %p710_p11, %p704_p5 }
  0x23   : > { %714 = shalt.err (!%p711_p7)
}
  0x24   : > { %s780_s26 = smov 768   ;;  %s781_s27 = smov 256  }
  0x25   : > { %s782_s28 = smov 16   ;;  %p584_p10 = scmp.ge.s32.totalorder %s777_s18, 1 }
  0x26   : > { %621 = dma.hbm_to_vmem [thread:$0]  (!%p860_p8), %s856_s30, 2048, %s858_s6, %s864_s8, %s780_s26, %s781_s27, %s782_s28  }
  0x27   : > { %p193_p12 = scmp.lt.s32.totalorder %s777_s18, 4 }
  0x29   : > { %p194_p13 = pnand %p584_p10, %p193_p12 }
  0x2a   : > { %s199_s29 = sand.u32 (!%p194_p13), 1, %s769_s16   ;;  %p968_p7 = scmp.ne.s32.totalorder (!%p194_p13), %s966_s24, 0 }
  0x2b   : > { %197 = sbr.rel (%p194_p13) target bundleno = 431 (0x1af), region = 36  ;;  %s585_s5 = sshll.u32 (!%p194_p13), %s199_s29, 7 }
  0x2c   : > { %s200_s9 = scalar_lea.sflag (!%p194_p13), [#allocation3], %s199_s29  ;;  %s888_s10 = scalar_lea.vmem (!%p194_p13), [#allocation2], %s585_s5 }
  0x30   : > { %756 = dma.done.wait (%p968_p7), %s200_s9, 2048  }
  0x31   : > { %758 = vsyncadd (%p968_p7), %s200_s9, 4294965248  ;;  %s586_s30 = sshll.u32 %s830_s19, 2  ;;  %p237_p8 = scmp.lt.s32.totalorder %s830_s19, 2 }
  0x32   : > { %p233_p0 = scmp.lt.s32.totalorder %s586_s30, 11  ;;  %p588_p1 = scmp.ne.s32.totalorder %s830_s19, 0 }
  0x33   : > { %s238_s18 = scalar_select %p237_p8, %s830_s19, 2 }
  0x34   : > { %s974_s30 = smov (!%p233_p0, %s586_s30), 11  ;;  %245 = sbr.rel (%p588_p1) target bundleno = 59 (0x3b), region = 44 }
  0x35   : > { %s587_s6 = sshll.u32 %s238_s18, 2  ;;  %s235_s11 = scalar_lea.vmem %s962_s2, %s974_s30 }
  0x36   : > { %s906_s24 = scalar_lea.vmem %s963_s3, %s587_s6 }
  0x39   : > { %v783_v0 = vmov 0.0  }
  0x3a   : > { %246 = vst [vmem:[#allocation5] sm:$0x3] %v783_v0 }
  0x3b PF: > { %v663_v1 = vld [vmem:[%s888_s10 + $0x64] ss:$16 sps:$4 sm:$0xff]   ;;  %v665_v2 = vld [vmem:[%s888_s10 + $0x6c] ss:$16 sps:$4 sm:$0xff]   ;;  %v784_v3 = vmov 0   ;;  %vm366_vm0 = vcmask 523264   ;;  %v266_v19 = vlaneseq  ;;  %v494_v63 = vstv %s830_s19 }
  0x3c   : > { %402 = vmatprep.mubr.bf16.mxu0 %v784_v3  ;;  %443 = vmatprep.mubr.bf16.mxu1 %v784_v3  ;;  %v667_v4 = vld [vmem:[%s888_s10 + $0x60] ss:$16 sps:$4 sm:$0xff]   ;;  %v668_v5 = vld [vmem:[%s888_s10 + $0x68] ss:$16 sps:$4 sm:$0xff]   ;;  %v669_v6 = vld [vmem:[%s888_s10 + $0x44] ss:$16 sps:$4 sm:$0xff]  }
  0x3d   : > { %378 = vmatprep.subr.bf16.mxu0 %v663_v1  ;;  %419 = vmatprep.subr.bf16.mxu1 %v665_v2  ;;  %v671_v7 = vld [vmem:[%s888_s10 + $0x4c] ss:$16 sps:$4 sm:$0xff]   ;;  %v673_v8 = vld [vmem:[%s888_s10 + $0x40] ss:$16 sps:$4 sm:$0xff]   ;;  %v674_v9 = vld [vmem:[%s888_s10 + $0x48] ss:$16 sps:$4 sm:$0xff]  }
  0x3e   : > { %379 = vmatpush1.bf16.msra.mxu0 %v667_v4  ;;  %420 = vmatpush1.bf16.msra.mxu1 %v668_v5  ;;  %v675_v10 = vld [vmem:[%s888_s10 + $0x24] ss:$16 sps:$4 sm:$0xff]   ;;  %v677_v11 = vld [vmem:[%s888_s10 + $0x2c] ss:$16 sps:$4 sm:$0xff]   ;;  %v679_v12 = vld [vmem:[%s888_s10 + $0x20] ss:$16 sps:$4 sm:$0xff]  }
  0x3f   : > { %380 = vmatprep.subr.bf16.mxu0 %v669_v6  ;;  %421 = vmatprep.subr.bf16.mxu1 %v671_v7  ;;  %v680_v13 = vld [vmem:[%s888_s10 + $0x28] ss:$16 sps:$4 sm:$0xff]   ;;  %v681_v14 = vld [vmem:[%s888_s10 + $0x4] ss:$16 sps:$4 sm:$0xff]   ;;  %v683_v15 = vld [vmem:[%s888_s10 + $0xc] ss:$16 sps:$4 sm:$0xff]  }
  0x40   : > { %v685_v16 = vld [vmem:[%s888_s10] ss:$16 sps:$4 sm:$0xff]   ;;  %v686_v17 = vld [vmem:[%s888_s10 + $0x8] ss:$16 sps:$4 sm:$0xff]   ;;  %v267_v20 = vshrl.u32 %v266_v19, 7  ;;  %vm482_vm1 = vcmask 1041408  }
  0x41   : > { %v247_v18 = vld [vmem:[%s960_s0] sm:$0x1]  ;;  %v493_v62 = vand.u32 127, %v266_v19  ;;  %v497_v0 = vld [vmem:[#allocation5] sm:$0x3]  ;;  %s785_s25 = smov [#allocation5]  }
  0x42   : > { %381 = vmatpush1.bf16.msra.mxu0 %v673_v8  ;;  %422 = vmatpush1.bf16.msra.mxu1 %v674_v9  ;;  %v268_v21 = vsub.s32 0, %v267_v20  ;;  %v276_v22 = vsub.s32 2, %v267_v20  ;;  %v264_v23 = vld [vmem:[%s235_s11] sm:$0xf]  ;;  %v272_v24 = vsub.s32 1, %v267_v20  ;;  %v280_v25 = vsub.s32 3, %v267_v20 }
  0x43   : > { %382 = vmatprep.subr.bf16.mxu0 %v675_v10  ;;  %423 = vmatprep.subr.bf16.mxu1 %v677_v11  ;;  %v456_v28 = vld [vmem:[%s906_s24] sm:$0xf]  ;;  %vm495_vm2 = vcmp.eq.s32.totalorder %v493_v62, %v494_v63  ;;  %s507_s26 = sshll.u32 %s785_s25, 4  ;;  %p623_p2 = scmp.eq.s32.totalorder %s830_s19, 2  ;;  %s508_s26 = int_to_ptr.vmem [resolvable:$true] %s507_s26 }
  0x44   : > { %v269_v26 = vrot.slane %v264_v23, %v268_v21  ;;  %v277_v27 = vrot.slane %v264_v23, %v276_v22  ;;  %v273_v29 = vrot.slane %v264_v23, %v272_v24  ;;  %v281_v30 = vrot.slane %v264_v23, %v280_v25  ;;  %s715_s27 = scalar_lea.vmem %s508_s26, 32  ;;  %p722_p6 = scmp.lt.s32.totalorder %s508_s26, %s508_s26 }
  0x45   : > { %v461_v34 = vrot.slane %v456_v28, %v268_v21  ;;  %v469_v36 = vrot.slane %v456_v28, %v276_v22  ;;  %v465_v38 = vrot.slane %v456_v28, %v272_v24  ;;  %v473_v46 = vrot.slane %v456_v28, %v280_v25  ;;  %p716_p3 = scmp.ne.s32.totalorder %s508_s26, %s715_s27  ;;  %p723_p9 = scmp.lt.s32.totalorder %s715_s27, %s715_s27 }
  0x46   : > { %383 = vmatpush1.bf16.msra.mxu0 %v679_v12  ;;  %424 = vmatpush1.bf16.msra.mxu1 %v680_v13 }
  0x47   : > { %384 = vmatprep.subr.bf16.mxu0 %v681_v14  ;;  %425 = vmatprep.subr.bf16.mxu1 %v683_v15  ;;  %p717_p4 = pnand %p716_p3, %p623_p2  ;;  %p724_p11 = por %p723_p9, %p722_p6 }
  0x49   : > { %p718_p5 = pneg %p717_p4 }
  0x4a   : > { %385 = vmatpush1.bf16.msra.mxu0 %v685_v16  ;;  %426 = vmatpush1.bf16.msra.mxu1 %v686_v17 }
  0x4b   : > { %p725_p10 = pnand %p724_p11, %p718_p5 }
  0x4d   : > { %605 = vmatmul.mubr.msk.bf16.vlgmr.msra.gmra.mxu0 %vm366_vm0, %v247_v18  ;;  %606 = vmatmul.mubr.msk.bf16.vlgmr.msra.gmra.mxu1 %vm366_vm0, %v247_v18 }
 0x10d   : > { %v404_v31 = vpop.f32.mrf.mxu0  ;;  %v445_v32 = vpop.f32.mrf.mxu1 }
 0x10e   : > { %v405_v33 = vadd.f32 %v404_v31, %v269_v26  ;;  %v446_v35 = vadd.f32 %v445_v32, %v277_v27 }
 0x10f   : > { %v406_v37 = vpop.f32.mrf.mxu0  ;;  %v447_v39 = vpop.f32.mrf.mxu1 }
 0x110   : > { %v452_v40 = vmax.f32 %v405_v33, 0.0  ;;  %v454_v41 = vmax.f32 %v446_v35, 0.0  ;;  %v407_v42 = vadd.f32 %v406_v37, %v273_v29  ;;  %v448_v43 = vadd.f32 %v447_v39, %v281_v30 }
 0x111   : > { %v408_v44 = vpop.f32.mrf.mxu0  ;;  %v449_v45 = vpop.f32.mrf.mxu1 }
 0x112   : > { %v478_v47 = vmul.f32 %v461_v34, %v452_v40  ;;  %v480_v48 = vmul.f32 %v469_v36, %v454_v41  ;;  %v453_v49 = vmax.f32 %v407_v42, 0.0  ;;  %v455_v50 = vmax.f32 %v448_v43, 0.0 }
 0x113   : > { %v409_v51 = vpop.f32.mrf.mxu0  ;;  %v450_v52 = vpop.f32.mrf.mxu1 }
 0x114   : > { %v479_v53 = vmul.f32 %v465_v38, %v453_v49  ;;  %v481_v54 = vmul.f32 %v473_v46, %v455_v50  ;;  %v483_v55 = vsel %vm482_vm1, %v478_v47, 0.0  ;;  %v486_v57 = vsel %vm482_vm1, %v480_v48, 0.0 }
 0x116   : > { %v484_v56 = vsel %vm482_vm1, %v479_v53, 0.0  ;;  %v488_v60 = vsel %vm482_vm1, %v481_v54, 0.0 }
 0x117   : > { %v485_v58 = vadd.f32 %v484_v56, %v483_v55 }
 0x119   : > { %v487_v59 = vadd.f32 %v486_v57, %v485_v58 }
 0x11b   : > { %v489_v61 = vadd.f32 %v488_v60, %v487_v59 }
 0x11d   : > { %490 = vadd.xlane.f32.xlu0 %v489_v61 }
 0x1a6   : > { %v491_v1 = vpop.xlane.xlu0 %490 }
 0x1a7   : > { %v496_v2 = vsel %vm495_vm2, %v491_v1, 0.0 }
 0x1a8   : > { %v498_v3 = vadd.f32 %v497_v0, %v496_v2 }
 0x1aa   : > { %499 = vst [vmem:[#allocation5] sm:$0x3] %v498_v3 }
 0x1ab   : > { %728 = shalt.err (!%p725_p10)
}
 0x1ac   : > { %615 = dma.vmem_to_hbm [thread:$0]  (%p623_p2), %s508_s26, 32, %s964_s4, [#allocation4]  }
 0x1ad   : > { %760 = dma.done.wait (%p623_p2), [#allocation4], 32  }
 0x1ae   : > { %762 = vsyncadd (%p623_p2), [#allocation4], 4294967264 }
 0x1af PF: > { %p15_p12 = scmp.ge.s32.totalorder %s833_s20, 5   ;;  %s969_s15 = smov %s769_s16 }
 0x1b0   : > { %s970_s16 = smov %s773_s17  ;;  %s971_s17 = smov %s843_s23 }
 0x1b1   : > { %s972_s18 = smov %s833_s20  ;;  %17 = sbr.rel (!%p15_p12) target bundleno = 4 (0x4), region = 83 }
 0x1b6   :  { %520 = vsyncpa [#allocation3], 1 }
 0x1b7   :  { %522 = vsyncpa [#allocation3 + $0x1], 1 }
 0x1b8   :  { %523 = vsyncpa [#allocation4], 1 }
 0x1b9   :  { %525 = vsyncpa [#allocation4 + $0x1], 1 }

</bundles_post_ra>
